<compile_context>
chip_gen: v7x
topology: tpu7x:2x2x1
jax: 0.10.0
libtpu: 0.0.40
codegen_flags: <defaults>
</compile_context>

<pallas_src>
import jax
import jax.numpy as jnp
from jax.experimental import pallas as pl
from jax.experimental.pallas import tpu as pltpu

LN_EPS = 1e-5
LANE = 128                  # TPU lane width
_VMEM_BUDGET = 40 << 20     # tile-selection budget; conservative for v7x (64 MiB)
_VMEM_LIMIT = 48 << 20      # explicit scoped-VMEM request (> v5e's 16 MiB default)


# --------------------------------------------------------------------------
# Kernels
# --------------------------------------------------------------------------

def _prenorm_linear_kernel(x_ref, gamma_ref, beta_ref, w_ref, bias_ref, o_ref):
    """Plain path: one token per row, block (TR, D).  D >= 128 (or fallback)."""
    x = x_ref[...].astype(jnp.float32)          # (TR, D)
    inv_d = 1.0 / x.shape[-1]
    # Single-pass LayerNorm stats (f32, torch semantics: biased variance).
    mean = jnp.sum(x, axis=-1, keepdims=True) * inv_d
    ex2 = jnp.sum(x * x, axis=-1, keepdims=True) * inv_d
    var = ex2 - mean * mean
    x_hat = (x - mean) * jax.lax.rsqrt(var + LN_EPS)
    y = x_hat * gamma_ref[...] + beta_ref[...]
    # fn = Linear(dim, dim): bf16 operands on the MXU, f32 accumulation.
    out = jnp.dot(y.astype(jnp.bfloat16), w_ref[...],
                  preferred_element_type=jnp.float32)
    o_ref[...] = (out + bias_ref[...]).astype(o_ref.dtype)


def _prenorm_linear_folded_kernel(x_ref, segavg_ref, gamma_ref, beta_ref,
                                  w_ref, bias_ref, o_ref):
    """Folded path: F = 128/dim tokens per 128-lane row (lane-dense).

    segavg is the (128,128) block-diagonal averaging matrix (1/dim within a
    token's lane segment), so x @ segavg gives every lane its own token's
    mean — segmented LayerNorm without any cross-lane shuffles or reshapes.
    w is the block-diagonal (128,128) bf16 weight = diag(W^T, ..., W^T).
    """
    x = x_ref[...].astype(jnp.float32)          # (TRF, 128)
    seg_avg = segavg_ref[...]                   # (128, 128) f32
    mean = jnp.dot(x, seg_avg, preferred_element_type=jnp.float32)
    ex2 = jnp.dot(x * x, seg_avg, preferred_element_type=jnp.float32)
    var = ex2 - mean * mean
    x_hat = (x - mean) * jax.lax.rsqrt(var + LN_EPS)
    y = x_hat * gamma_ref[...] + beta_ref[...]
    out = jnp.dot(y.astype(jnp.bfloat16), w_ref[...],
                  preferred_element_type=jnp.float32)
    o_ref[...] = (out + bias_ref[...]).astype(o_ref.dtype)


# --------------------------------------------------------------------------
# One-time parameter prep (hoisted out of the per-call path)
# --------------------------------------------------------------------------

def make_prenorm_linear_params(gamma, beta, w, bias):
    """Prepare LayerNorm + Linear params once (transpose, bf16 cast, folding)."""
    D = int(gamma.shape[-1])
    gamma = jnp.asarray(gamma, jnp.float32)
    beta = jnp.asarray(beta, jnp.float32)
    bias = jnp.asarray(bias, jnp.float32)
    w_t = jnp.asarray(w, jnp.float32).T          # (D, D): out = y @ W^T

    params = {
        "dim": D,
        "plain": dict(
            gamma=gamma.reshape(1, D),
            beta=beta.reshape(1, D),
            w=w_t.astype(jnp.bfloat16),
            bias=bias.reshape(1, D),
        ),
        "fold": None,
    }

    if D < LANE and LANE % D == 0:
        F = LANE // D
        eye_f = jnp.eye(F, dtype=jnp.float32)
        params["fold"] = dict(
            factor=F,
            # block-diag averaging matrix: 1/D within each token's lane segment
            seg_avg=jnp.kron(eye_f, jnp.full((D, D), 1.0 / D, jnp.float32)),
            gamma=jnp.tile(gamma, F).reshape(1, LANE),
            beta=jnp.tile(beta, F).reshape(1, LANE),
            # block-diag weight: diag(W^T, ..., W^T), bf16 for the MXU
            w=jnp.kron(eye_f, w_t).astype(jnp.bfloat16),
            bias=jnp.tile(bias, F).reshape(1, LANE),
        )
    return params


# --------------------------------------------------------------------------
# Tiling / pallas_call wrappers
# --------------------------------------------------------------------------

def _pick_row_tile(n_rows, width, out_itemsize, resident_bytes,
                   target_bytes=2 << 20):
    """Rows per grid step: ~target_bytes of x per step (per-step overhead is
    ~0.35 us, so tiny steps are overhead-bound), clamped so double-buffered
    x/out tiles + resident weight + in-kernel f32 temporaries fit VMEM."""
    if n_rows <= 8:
        return n_rows
    tr = max(256, target_bytes // (width * 4))
    tr = min(tr, n_rows)
    tr = max(8, (tr // 8) * 8)

    def vmem_est(t):
        x_tile = t * width * 4
        o_tile = t * width * out_itemsize
        return 2 * (x_tile + o_tile) + 2 * resident_bytes + 3 * x_tile

    while tr > 8 and vmem_est(tr) > _VMEM_BUDGET:
        tr = max(8, ((tr // 2) // 8) * 8)
    return tr


def _forward_plain(x2, p, out_dtype):
    R, D = x2.shape
    w = p["w"]
    tr = _pick_row_tile(R, D, jnp.dtype(out_dtype).itemsize,
                        w.size * w.dtype.itemsize)
    grid = (pl.cdiv(R, tr),)
    # TODO(synk): for very large D (>~2048 on v7x) also tile W^T's output
    # column axis (second grid dim, split across TCs) so the resident weight
    # fits v7x's 64 MiB VMEM; single resident W^T is kept here for simplicity.
    return pl.pallas_call(
        _prenorm_linear_kernel,
        out_shape=jax.ShapeDtypeStruct((R, D), out_dtype),
        grid_spec=pltpu.PrefetchScalarGridSpec(
            num_scalar_prefetch=0,
            grid=grid,
            in_specs=[
                pl.BlockSpec((tr, D), lambda i: (i, 0)),   # x row tile (pipelined)
                pl.BlockSpec((1, D), lambda i: (0, 0)),    # gamma (resident)
                pl.BlockSpec((1, D), lambda i: (0, 0)),    # beta  (resident)
                pl.BlockSpec((D, D), lambda i: (0, 0)),    # W^T   (resident, bf16)
                pl.BlockSpec((1, D), lambda i: (0, 0)),    # bias  (resident)
            ],
            out_specs=pl.BlockSpec((tr, D), lambda i: (i, 0)),
        ),
        compiler_params=pltpu.CompilerParams(
            dimension_semantics=("parallel",),
            vmem_limit_bytes=_VMEM_LIMIT),
    )(x2, p["gamma"], p["beta"], p["w"], p["bias"])


def _forward_folded(x2, p, out_dtype):
    Rf, L = x2.shape                      # L == 128
    w = p["w"]
    trf = _pick_row_tile(Rf, L, jnp.dtype(out_dtype).itemsize,
                         w.size * w.dtype.itemsize)
    grid = (pl.cdiv(Rf, trf),)
    # Constant-index-map operands below are revisited blocks (DMA'd once and
    # kept resident); they are tiny here (<=64 KiB each).
    return pl.pallas_call(
        _prenorm_linear_folded_kernel,
        out_shape=jax.ShapeDtypeStruct((Rf, L), out_dtype),
        grid_spec=pltpu.PrefetchScalarGridSpec(
            num_scalar_prefetch=0,
            grid=grid,
            in_specs=[
                pl.BlockSpec((trf, L), lambda i: (i, 0)),  # folded x (pipelined)
                pl.BlockSpec((L, L), lambda i: (0, 0)),    # segment-avg matrix
                pl.BlockSpec((1, L), lambda i: (0, 0)),    # gamma (tiled)
                pl.BlockSpec((1, L), lambda i: (0, 0)),    # beta  (tiled)
                pl.BlockSpec((L, L), lambda i: (0, 0)),    # block-diag W^T (bf16)
                pl.BlockSpec((1, L), lambda i: (0, 0)),    # bias  (tiled)
            ],
            out_specs=pl.BlockSpec((trf, L), lambda i: (i, 0)),
        ),
        compiler_params=pltpu.CompilerParams(
            dimension_semantics=("parallel",),
            vmem_limit_bytes=_VMEM_LIMIT),
    )(x2, p["seg_avg"], p["gamma"], p["beta"], p["w"], p["bias"])


def prenorm_forward(x, params, *, out_dtype=None):
    """x: (B, S, D) -> (B, S, D) = Linear(LayerNorm(x)) with prepped params."""
    B, S, D = x.shape
    assert D == params["dim"]
    out_dtype = x.dtype if out_dtype is None else out_dtype
    R = B * S

    fold = params["fold"]
    if fold is not None and R % fold["factor"] == 0:
        # Free row-major view: (R, D) == (R/F, 128) in flat memory.
        x2 = x.reshape(R // fold["factor"], LANE)
        out2 = _forward_folded(x2, fold, out_dtype)
        return out2.reshape(B, S, D)

    # TODO(synk): for D < 128 that does not divide 128, pad D to 128 with
    # masked LN stats instead of taking this lane-sparse fallback.
    out2 = _forward_plain(x.reshape(R, D), params["plain"], out_dtype)
    return out2.reshape(B, S, D)


# --------------------------------------------------------------------------
# Reference + self-check
# --------------------------------------------------------------------------

def prenorm_reference(x, gamma, beta, w, bias):
    """Pure-f32 reference (torch semantics)."""
    xf = x.astype(jnp.float32)
    mean = jnp.mean(xf, axis=-1, keepdims=True)
    var = jnp.mean((xf - mean) ** 2, axis=-1, keepdims=True)
    y = (xf - mean) / jnp.sqrt(var + LN_EPS) * gamma + beta
    return (y @ w.T.astype(jnp.float32) + bias).astype(x.dtype)


def _check(B, S, D, key):
    k_x, k_w, k_b = jax.random.split(key, 3)
    x = jax.random.normal(k_x, (B, S, D), dtype=jnp.float32)
    gamma = jnp.ones((D,), dtype=jnp.float32)   # torch LayerNorm default init
    beta = jnp.zeros((D,), dtype=jnp.float32)
    w = jax.random.normal(k_w, (D, D), dtype=jnp.float32) * 0.05
    bias = jax.random.normal(k_b, (D,), dtype=jnp.float32) * 0.01

    params = make_prenorm_linear_params(gamma, beta, w, bias)  # one-time prep
    out = jax.block_until_ready(prenorm_forward(x, params))

    ref = prenorm_reference(x, gamma, beta, w, bias)
    assert out.shape == (B, S, D)
    # Tolerance relaxed vs pure-f32 reference: the matmul uses bf16 operands
    # (f32 accumulation) on the MXU.
    assert jnp.allclose(out, ref, atol=2e-2, rtol=2e-2), f"mismatch (D={D})"


if __name__ == "__main__":
    key = jax.random.PRNGKey(0)
    k1, k2 = jax.random.split(key)
    _check(2, 8, 32, k1)     # lane-dense folded path (dim < 128, Fusformer-like)
    _check(2, 8, 128, k2)    # plain path (dim a multiple of 128)
    print("KERNEL_OK")
</pallas_src>

<mosaic_0001>
module attributes {stable_mosaic.version = 11 : i64} {
  func.func @_prenorm_linear_folded_kernel(%arg0: i32, %arg1: memref<4x128xf32, #tpu.memory_space<vmem>>, %arg2: memref<128x128xf32, #tpu.memory_space<vmem>>, %arg3: memref<1x128xf32, #tpu.memory_space<vmem>>, %arg4: memref<1x128xf32, #tpu.memory_space<vmem>>, %arg5: memref<128x128xbf16, #tpu.memory_space<vmem>>, %arg6: memref<1x128xf32, #tpu.memory_space<vmem>>, %arg7: memref<4x128xf32, #tpu.memory_space<vmem>>) attributes {dimension_semantics = [#tpu.dimension_semantics<parallel>], iteration_bounds = array<i64: 1>, scalar_prefetch = 0 : i64, scratch_operands = 0 : i64, tpu.core_type = #tpu.core_type<tc>, window_params = [{transform_indices = @transform_0, window_bounds = array<i64: 4, 128>}, {pipeline_mode = #tpu.pipeline_mode<synchronous>, transform_indices = @transform_1, window_bounds = array<i64: 128, 128>}, {pipeline_mode = #tpu.pipeline_mode<synchronous>, transform_indices = @transform_2, window_bounds = array<i64: 1, 128>}, {pipeline_mode = #tpu.pipeline_mode<synchronous>, transform_indices = @transform_3, window_bounds = array<i64: 1, 128>}, {pipeline_mode = #tpu.pipeline_mode<synchronous>, transform_indices = @transform_4, window_bounds = array<i64: 128, 128>}, {pipeline_mode = #tpu.pipeline_mode<synchronous>, transform_indices = @transform_5, window_bounds = array<i64: 1, 128>}, {transform_indices = @transform_6, window_bounds = array<i64: 4, 128>}]} {
    %c0 = arith.constant 0 : index
    %c0_0 = arith.constant 0 : index
    %0 = vector.load %arg1[%c0, %c0_0] : memref<4x128xf32, #tpu.memory_space<vmem>>, vector<4x128xf32>
    %c0_1 = arith.constant 0 : index
    %c0_2 = arith.constant 0 : index
    %1 = vector.load %arg2[%c0_1, %c0_2] : memref<128x128xf32, #tpu.memory_space<vmem>>, vector<128x128xf32>
    %cst = arith.constant dense<0.000000e+00> : vector<4x128xf32>
    %2 = tpu.matmul %0, %1, %cst {dimension_numbers = #tpu.dot_dimension_numbers<[1], [0], [0], [1], [0, 0, 1, 1], [], []>} : vector<4x128xf32>, vector<128x128xf32>, vector<4x128xf32> -> vector<4x128xf32>
    %3 = arith.mulf %0, %0 : vector<4x128xf32>
    %cst_3 = arith.constant dense<0.000000e+00> : vector<4x128xf32>
    %4 = tpu.matmul %3, %1, %cst_3 {dimension_numbers = #tpu.dot_dimension_numbers<[1], [0], [0], [1], [0, 0, 1, 1], [], []>} : vector<4x128xf32>, vector<128x128xf32>, vector<4x128xf32> -> vector<4x128xf32>
    %5 = arith.mulf %2, %2 : vector<4x128xf32>
    %6 = arith.subf %4, %5 : vector<4x128xf32>
    %7 = arith.subf %0, %2 : vector<4x128xf32>
    %cst_4 = arith.constant 9.99999974E-6 : f32
    %8 = vector.broadcast %cst_4 : f32 to vector<4x128xf32>
    %9 = arith.addf %6, %8 : vector<4x128xf32>
    %10 = math.rsqrt %9 : vector<4x128xf32>
    %11 = arith.mulf %7, %10 : vector<4x128xf32>
    %c0_5 = arith.constant 0 : index
    %c0_6 = arith.constant 0 : index
    %12 = vector.load %arg3[%c0_5, %c0_6] : memref<1x128xf32, #tpu.memory_space<vmem>>, vector<1x128xf32>
    %13 = vector.broadcast %12 : vector<1x128xf32> to vector<4x128xf32>
    %14 = arith.mulf %11, %13 : vector<4x128xf32>
    %c0_7 = arith.constant 0 : index
    %c0_8 = arith.constant 0 : index
    %15 = vector.load %arg4[%c0_7, %c0_8] : memref<1x128xf32, #tpu.memory_space<vmem>>, vector<1x128xf32>
    %16 = vector.broadcast %15 : vector<1x128xf32> to vector<4x128xf32>
    %17 = arith.addf %14, %16 : vector<4x128xf32>
    %18 = arith.truncf %17 : vector<4x128xf32> to vector<4x128xbf16>
    %c0_9 = arith.constant 0 : index
    %c0_10 = arith.constant 0 : index
    %19 = vector.load %arg5[%c0_9, %c0_10] : memref<128x128xbf16, #tpu.memory_space<vmem>>, vector<128x128xbf16>
    %cst_11 = arith.constant dense<0.000000e+00> : vector<4x128xf32>
    %20 = tpu.matmul %18, %19, %cst_11 {dimension_numbers = #tpu.dot_dimension_numbers<[1], [0], [0], [1], [0, 0, 1, 1], [], []>} : vector<4x128xbf16>, vector<128x128xbf16>, vector<4x128xf32> -> vector<4x128xf32>
    %c0_12 = arith.constant 0 : index
    %c0_13 = arith.constant 0 : index
    %21 = vector.load %arg6[%c0_12, %c0_13] : memref<1x128xf32, #tpu.memory_space<vmem>>, vector<1x128xf32>
    %22 = vector.broadcast %21 : vector<1x128xf32> to vector<4x128xf32>
    %23 = arith.addf %20, %22 : vector<4x128xf32>
    %c0_14 = arith.constant 0 : index
    %c0_15 = arith.constant 0 : index
    %24 = vector.load %arg7[%c0_14, %c0_15] : memref<4x128xf32, #tpu.memory_space<vmem>>, vector<4x128xf32>
    tpu.vector_store %arg7[%c0_14, %c0_15], %23 {strides = array<i32>} : memref<4x128xf32, #tpu.memory_space<vmem>>, vector<4x128xf32>,
    return
  }
  func.func @transform_0(%arg0: i32) -> (i32, i32) {
    %c0_i32 = arith.constant 0 : i32
    %c0_i32_0 = arith.constant 0 : i32
    return %arg0, %c0_i32 : i32, i32
  }
  func.func @transform_1(%arg0: i32) -> (i32, i32) {
    %c0_i32 = arith.constant 0 : i32
    %c0_i32_0 = arith.constant 0 : i32
    %c0_i32_1 = arith.constant 0 : i32
    return %c0_i32, %c0_i32_0 : i32, i32
  }
  func.func @transform_2(%arg0: i32) -> (i32, i32) {
    %c0_i32 = arith.constant 0 : i32
    %c0_i32_0 = arith.constant 0 : i32
    %c0_i32_1 = arith.constant 0 : i32
    return %c0_i32, %c0_i32_0 : i32, i32
  }
  func.func @transform_3(%arg0: i32) -> (i32, i32) {
    %c0_i32 = arith.constant 0 : i32
    %c0_i32_0 = arith.constant 0 : i32
    %c0_i32_1 = arith.constant 0 : i32
    return %c0_i32, %c0_i32_0 : i32, i32
  }
  func.func @transform_4(%arg0: i32) -> (i32, i32) {
    %c0_i32 = arith.constant 0 : i32
    %c0_i32_0 = arith.constant 0 : i32
    %c0_i32_1 = arith.constant 0 : i32
    return %c0_i32, %c0_i32_0 : i32, i32
  }
  func.func @transform_5(%arg0: i32) -> (i32, i32) {
    %c0_i32 = arith.constant 0 : i32
    %c0_i32_0 = arith.constant 0 : i32
    %c0_i32_1 = arith.constant 0 : i32
    return %c0_i32, %c0_i32_0 : i32, i32
  }
  func.func @transform_6(%arg0: i32) -> (i32, i32) {
    %c0_i32 = arith.constant 0 : i32
    %c0_i32_0 = arith.constant 0 : i32
    return %arg0, %c0_i32 : i32, i32
  }
}

</mosaic_0001>

<bundles_post_ra>
// kernel: tpu_custom_call.1
= control target key start
LH: loop header
LB: loop body
LE: loop exit
PB: predicated region body
PF: predicated region fallthrough
CT: control target
= control target key end

     0   :  { %11 = vsyncpa [#allocation3], 0  ;;  %s797_s0 = inlined_call_operand.hbm [shape: f32[4,128], index: 0, kind: input, shape index: {}]   ;;  %s798_s1 = inlined_call_operand.hbm [shape: f32[128,128], index: 1, kind: input, shape index: {}]   ;;  %s799_s2 = inlined_call_operand.vmem [shape: f32[1,128], index: 2, kind: input, shape index: {}]   ;;  %s800_s3 = inlined_call_operand.vmem [shape: f32[1,128], index: 3, kind: input, shape index: {}]   ;;  %s801_s4 = inlined_call_operand.hbm [shape: bf16[128,128], index: 4, kind: input, shape index: {}]   ;;  %s802_s5 = inlined_call_operand.vmem [shape: f32[1,128], index: 5, kind: input, shape index: {}]   ;;  %s803_s6 = inlined_call_operand.hbm [shape: f32[4,128], index: 6, kind: output, shape index: {}]  }
   0x1   :  { %12 = vsyncpa [#allocation6], 0 }
   0x2   :  { %13 = vsyncpa [#allocation4], 0  ;;  %s680_s21 = smov [#allocation5]   ;;  %s586_s25 = scalar_lea.hbm %s798_s1, 2048 }
   0x3   :  { %s29_s22 = sshll.u32 %s680_s21, 4  ;;  %p587_p0 = scmp.ne.s32.totalorder %s798_s1, %s586_s25  ;;  %s30_s22 = int_to_ptr.vmem [resolvable:$true] %s29_s22 }
   0x4   :  { %p590_p1 = scmp.lt.u32.totalorder %s586_s25, %s798_s1 }
   0x6   :  { %p592_p2 = pnand %p590_p1, %p587_p0 }
   0x8   :  { %595 = shalt.err (!%p592_p2)
}
   0x9   :  { %s596_s30 = scalar_lea.vmem %s30_s22, 2048  ;;  %p601_p4 = scmp.lt.s32.totalorder %s30_s22, %s30_s22 }
   0xa   :  { %p597_p3 = scmp.ne.s32.totalorder %s30_s22, %s596_s30  ;;  %p602_p5 = scmp.lt.s32.totalorder %s596_s30, %s596_s30 }
   0xc   :  { %p603_p6 = por %p602_p5, %p601_p4 }
   0xe   :  { %p604_p7 = pnand %p603_p6, %p597_p3 }
  0x10   :  { %607 = shalt.err (!%p604_p7)
}
  0x11   :  { %s681_s7 = smov 128   ;;  %s682_s8 = smov 8  }
  0x12   :  { %35 = dma.hbm_to_vmem [thread:$0]  %s798_s1, 2048, %s30_s22, [#allocation6], %s681_s7, %s681_s7, %s682_s8  }
  0x13   :  { %s683_s11 = smov [#allocation2]   ;;  %s684_s13 = smov [#allocation7]  }
  0x14   :  { %s20_s12 = sshll.u32 %s683_s11, 4  ;;  %s45_s14 = sshll.u32 %s684_s13, 4  ;;  %s21_s12 = int_to_ptr.vmem [resolvable:$true] %s20_s12  ;;  %s46_s14 = int_to_ptr.vmem [resolvable:$true] %s45_s14 }
  0x15   :  { %s608_s17 = scalar_lea.hbm %s797_s0, 64 }
  0x16   :  { %p609_p8 = scmp.ne.s32.totalorder %s797_s0, %s608_s17  ;;  %p612_p9 = scmp.lt.u32.totalorder %s608_s17, %s797_s0 }
  0x18   :  { %p614_p10 = pnand %p612_p9, %p609_p8 }
  0x1a   :  { %617 = shalt.err (!%p614_p10)
}
  0x1b   :  { %s618_s1 = scalar_lea.vmem %s21_s12, 64  ;;  %p623_p12 = scmp.lt.s32.totalorder %s21_s12, %s21_s12 }
  0x1c   :  { %p619_p11 = scmp.ne.s32.totalorder %s21_s12, %s618_s1  ;;  %p624_p13 = scmp.lt.s32.totalorder %s618_s1, %s618_s1 }
  0x1e   :  { %p625_p0 = por %p624_p13, %p623_p12 }
  0x20   :  { %p626_p1 = pnand %p625_p0, %p619_p11 }
  0x22   :  { %629 = shalt.err (!%p626_p1)
}
  0x23   :  { %23 = dma.hbm_to_vmem [thread:$0]  %s797_s0, 64, %s21_s12, [#allocation3]  }
  0x24   :  { %s630_s26 = scalar_lea.hbm %s801_s4, 1024 }
  0x25   :  { %p631_p2 = scmp.ne.s32.totalorder %s801_s4, %s630_s26  ;;  %p634_p3 = scmp.lt.u32.totalorder %s630_s26, %s801_s4 }
  0x27   :  { %p636_p4 = pnand %p634_p3, %p631_p2 }
  0x29   :  { %639 = shalt.err (!%p636_p4)
}
  0x2a   :  { %s640_s7 = scalar_lea.vmem %s46_s14, 1024  ;;  %p645_p6 = scmp.lt.s32.totalorder %s46_s14, %s46_s14 }
  0x2b   :  { %p641_p5 = scmp.ne.s32.totalorder %s46_s14, %s640_s7  ;;  %p646_p7 = scmp.lt.s32.totalorder %s640_s7, %s640_s7 }
  0x2d   :  { %p647_p8 = por %p646_p7, %p645_p6 }
  0x2f   :  { %p648_p9 = pnand %p647_p8, %p641_p5 }
  0x31   :  { %651 = shalt.err (!%p648_p9)
}
  0x32   :  { %s685_s0 = smov 64   ;;  %s686_s8 = smov 4  }
  0x33   :  { %51 = dma.hbm_to_vmem [thread:$0]  %s801_s4, 1024, %s46_s14, [#allocation6], %s685_s0, %s685_s0, %s686_s8  }
  0x34   :  { %674 = dma.done.wait [#allocation3], 64  }
  0x35   :  { %675 = vsyncadd [#allocation3], 4294967232 }
  0x36   :  { %676 = dma.done.wait [#allocation6], 3072  }
  0x37   :  { %677 = vsyncadd [#allocation6], 4294964224  ;;  %v687_v0 = vmov 0.0|0.0   ;;  %vm688_vm0 = vmmov 0   ;;  %v689_v1 = vmov 0.0   ;;  %v65_v2 = vld [vmem:[#allocation5] sm:$0xff] }
  0x38   :  { %517 = vmatprep.subr.bf16.mxu1 %v687_v0  ;;  %459 = vmatprep.mubr.msk.f32.mxu1 %vm688_vm0, %v689_v1  ;;  %v66_v3 = vld [vmem:[#allocation5 + $0x8] sm:$0xff]  ;;  %v67_v4 = vld [vmem:[#allocation5 + $0x10] sm:$0xff]  ;;  %v68_v6 = vld [vmem:[#allocation5 + $0x18] sm:$0xff]  ;;  %s690_s16 = smov [#allocation8]  }
  0x39   :  { %497 = vmatprep.subr.bf16.mxu0 %v689_v1  ;;  %513 = vmatprep.mubr.msk.bf16.mxu0 %vm688_vm0, %v689_v1  ;;  %v518_v5 = vpack.c.bf16 %v66_v3, %v65_v2  ;;  %v521_v7 = vpack.c.bf16 %v68_v6, %v67_v4  ;;  %v69_v8 = vld [vmem:[#allocation5 + $0x20] sm:$0xff]  ;;  %v70_v9 = vld [vmem:[#allocation5 + $0x28] sm:$0xff]  ;;  %v71_v10 = vld [vmem:[#allocation5 + $0x30] sm:$0xff]  ;;  %s363_s17 = sshll.u32 %s690_s16, 4  ;;  %s364_s17 = int_to_ptr.vmem [resolvable:$true] %s363_s17 }
  0x3a   :  { %v72_v11 = vld [vmem:[#allocation5 + $0x38] sm:$0xff]  ;;  %v524_v12 = vpack.c.bf16 %v70_v9, %v69_v8  ;;  %v73_v14 = vld [vmem:[#allocation5 + $0x40] sm:$0xff]  ;;  %v74_v15 = vld [vmem:[#allocation5 + $0x48] sm:$0xff]  ;;  %p657_p11 = scmp.lt.s32.totalorder %s364_s17, %s364_s17 }
  0x3b   :  { %519 = vmatpush3.bf16.msra.mxu1 %v518_v5  ;;  %v527_v13 = vpack.c.bf16 %v72_v11, %v71_v10  ;;  %v530_v16 = vpack.c.bf16 %v74_v15, %v73_v14  ;;  %v75_v17 = vld [vmem:[#allocation5 + $0x50] sm:$0xff]  ;;  %v76_v18 = vld [vmem:[#allocation5 + $0x58] sm:$0xff]  ;;  %v77_v20 = vld [vmem:[#allocation5 + $0x60] sm:$0xff] }
  0x3c   :  { %520 = vmatprep.subr.bf16.mxu1 %v687_v0  ;;  %v533_v19 = vpack.c.bf16 %v76_v18, %v75_v17  ;;  %v78_v21 = vld [vmem:[#allocation5 + $0x68] sm:$0xff]  ;;  %v79_v23 = vld [vmem:[#allocation5 + $0x70] sm:$0xff]  ;;  %v80_v24 = vld [vmem:[#allocation5 + $0x78] sm:$0xff] }
  0x3d   :  { %v536_v22 = vpack.c.bf16 %v78_v21, %v77_v20  ;;  %v539_v25 = vpack.c.bf16 %v80_v24, %v79_v23  ;;  %v64_v26 = vld [vmem:[#allocation2] sm:$0xf]  ;;  %v576_v28 = vld [vmem:[#allocation7] sm:$0xff]   ;;  %v577_v29 = vld [vmem:[#allocation7 + $0x8] sm:$0xff]  }
  0x3e   :  { %v151_v27 = vmul.f32 %v64_v26, %v64_v26  ;;  %498 = vmatpush3.bf16.msra.mxu0 %v576_v28  ;;  %v578_v30 = vld [vmem:[#allocation7 + $0x10] sm:$0xff]   ;;  %v579_v31 = vld [vmem:[#allocation7 + $0x18] sm:$0xff]   ;;  %v580_v32 = vld [vmem:[#allocation7 + $0x20] sm:$0xff]  }
  0x3f   :  { %522 = vmatpush3.bf16.msra.mxu1 %v521_v7  ;;  %499 = vmatprep.subr.bf16.mxu0 %v689_v1  ;;  %v581_v33 = vld [vmem:[#allocation7 + $0x28] sm:$0xff]   ;;  %v582_v34 = vld [vmem:[#allocation7 + $0x30] sm:$0xff]   ;;  %v583_v35 = vld [vmem:[#allocation7 + $0x38] sm:$0xff]  }
  0x40   :  { %523 = vmatprep.subr.bf16.mxu1 %v687_v0  ;;  %v373_v45 = vld [vmem:[%s799_s2] ss:$0 sm:$0xff]  ;;  %s652_s2 = scalar_lea.vmem %s364_s17, 64 }
  0x41   :  { %v374_v47 = vld [vmem:[%s800_s3] ss:$0 sm:$0xff]  ;;  %p653_p10 = scmp.ne.s32.totalorder %s364_s17, %s652_s2  ;;  %p658_p12 = scmp.lt.s32.totalorder %s652_s2, %s652_s2 }
  0x42   :  { %500 = vmatpush3.bf16.msra.mxu0 %v577_v29  ;;  %v375_v51 = vld [vmem:[%s802_s5] ss:$0 sm:$0xff] }
  0x43   :  { %525 = vmatpush3.bf16.msra.mxu1 %v524_v12  ;;  %501 = vmatprep.subr.bf16.mxu0 %v689_v1  ;;  %p659_p13 = por %p658_p12, %p657_p11 }
  0x44   :  { %526 = vmatprep.subr.bf16.mxu1 %v687_v0 }
  0x45   :  { %p660_p0 = pnand %p659_p13, %p653_p10 }
  0x46   :  { %502 = vmatpush3.bf16.msra.mxu0 %v578_v30 }
  0x47   :  { %528 = vmatpush3.bf16.msra.mxu1 %v527_v13  ;;  %503 = vmatprep.subr.bf16.mxu0 %v689_v1 }
  0x48   :  { %529 = vmatprep.subr.bf16.mxu1 %v687_v0 }
  0x4a   :  { %504 = vmatpush3.bf16.msra.mxu0 %v579_v31 }
  0x4b   :  { %531 = vmatpush3.bf16.msra.mxu1 %v530_v16  ;;  %505 = vmatprep.subr.bf16.mxu0 %v689_v1 }
  0x4c   :  { %532 = vmatprep.subr.bf16.mxu1 %v687_v0 }
  0x4e   :  { %506 = vmatpush3.bf16.msra.mxu0 %v580_v32 }
  0x4f   :  { %534 = vmatpush3.bf16.msra.mxu1 %v533_v19  ;;  %507 = vmatprep.subr.bf16.mxu0 %v689_v1 }
  0x50   :  { %535 = vmatprep.subr.bf16.mxu1 %v687_v0 }
  0x52   :  { %508 = vmatpush3.bf16.msra.mxu0 %v581_v33 }
  0x53   :  { %537 = vmatpush3.bf16.msra.mxu1 %v536_v22  ;;  %509 = vmatprep.subr.bf16.mxu0 %v689_v1 }
  0x54   :  { %538 = vmatprep.subr.bf16.mxu1 %v687_v0 }
  0x56   :  { %510 = vmatpush3.bf16.msra.mxu0 %v582_v34 }
  0x57   :  { %540 = vmatpush3.bf16.msra.mxu1 %v539_v25  ;;  %511 = vmatprep.subr.bf16.mxu0 %v689_v1 }
  0x58   :  { %541 = vmatprep.subr.bf16.mxu1 %v687_v0 }
  0x5a   :  { %460 = vmatmul.mubr.f32.vlgmr.msra.gmra.mrb[0].mxu1 %v64_v26  ;;  %512 = vmatpush3.bf16.msra.mxu0 %v583_v35 }
  0x5b   :  { %543 = vmatpush3.bf16.msra.mxu1 %v518_v5  ;;  %494 = vmatprep.mubr.msk.f32.mxu1 %vm688_vm0, %v689_v1 }
  0x5c   :  { %544 = vmatprep.subr.bf16.mxu1 %v687_v0 }
  0x5f   :  { %546 = vmatpush3.bf16.msra.mxu1 %v521_v7 }
  0x60   :  { %547 = vmatprep.subr.bf16.mxu1 %v687_v0 }
  0x63   :  { %549 = vmatpush3.bf16.msra.mxu1 %v524_v12 }
  0x64   :  { %550 = vmatprep.subr.bf16.mxu1 %v687_v0 }
  0x67   :  { %552 = vmatpush3.bf16.msra.mxu1 %v527_v13 }
  0x68   :  { %553 = vmatprep.subr.bf16.mxu1 %v687_v0 }
  0x6b   :  { %555 = vmatpush3.bf16.msra.mxu1 %v530_v16 }
  0x6c   :  { %556 = vmatprep.subr.bf16.mxu1 %v687_v0 }
  0x6f   :  { %558 = vmatpush3.bf16.msra.mxu1 %v533_v19 }
  0x70   :  { %559 = vmatprep.subr.bf16.mxu1 %v687_v0 }
  0x73   :  { %561 = vmatpush3.bf16.msra.mxu1 %v536_v22 }
  0x74   :  { %562 = vmatprep.subr.bf16.mxu1 %v687_v0 }
  0x77   :  { %564 = vmatpush3.bf16.msra.mxu1 %v539_v25 }
  0x7a   :  { %495 = vmatmul.mubr.f32.vlgmr.msra.gmra.mrb[2].mxu1 %v151_v27 }
 0x12d   :  { %v147_v36 = vpop.f32.mrb[0].mxu1 }
 0x12e   :  { %v461_v37 = vpop.f32.mrb[1].mxu1  ;;  %v222_v38 = vmul.f32 %v147_v36, %v147_v36  ;;  %v224_v43 = vsub.f32 %v64_v26, %v147_v36 }
 0x14d   :  { %v218_v39 = vpop.f32.mrb[2].mxu1 }
 0x14e   :  { %v223_v40 = vsub.f32 %v218_v39, %v222_v38  ;;  %v496_v41 = vpop.f32.mrb[3].mxu1 }
 0x150   :  { %v225_v42 = vadd.f32 1e-05, %v223_v40 }
 0x152   :  { %584 = vrsqrt.f32 %v225_v42 }
 0x15c   :  { %v585_v44 = vpop.eup %584 }
 0x15d   :  { %v227_v46 = vmul.f32 %v585_v44, %v224_v43 }
 0x15f   :  { %v235_v48 = vmul.f32 %v373_v45, %v227_v46 }
 0x161   :  { %v243_v49 = vadd.f32 %v374_v47, %v235_v48 }
 0x163   :  { %v244_v50 = vpack.c.bf16 %v243_v49, %v243_v49 }
 0x165   :  { %514 = vmatmul.mubr.bf16.vlgmr.msra.gmra.mrb[0].mxu0 %v244_v50 }
 0x238   :  { %v350_v52 = vpop.f32.mrb[0].mxu0 }
 0x239   :  { %v351_v53 = vadd.f32 %v375_v51, %v350_v52  ;;  %v515_v54 = vpop.f32.mrb[1].mxu0 }
 0x23a   :  { %v353_v55 = vpop.f32.mrb[2].mxu0 }
 0x23b   :  { %356 = vst [vmem:[#allocation8] sm:$0xf] %v351_v53  ;;  %v516_v56 = vpop.f32.mrb[3].mxu0 }
 0x23c   :  { %663 = shalt.err (!%p660_p0)
}
 0x23d   :  { %s664_s5 = scalar_lea.hbm %s803_s6, 64 }
 0x23e   :  { %p665_p1 = scmp.ne.s32.totalorder %s803_s6, %s664_s5  ;;  %p668_p2 = scmp.lt.u32.totalorder %s664_s5, %s803_s6 }
 0x240   :  { %p670_p3 = pnand %p668_p2, %p665_p1 }
 0x242   :  { %673 = shalt.err (!%p670_p3)
}
 0x243   :  { %366 = dma.vmem_to_hbm [thread:$0]  %s364_s17, 64, %s803_s6, [#allocation4]  }
 0x244   :  { %678 = dma.done.wait [#allocation4], 64  }
 0x245   :  { %679 = vsyncadd [#allocation4], 4294967232 }
 0x246   :  { %370 = vsyncpa [#allocation3], 1 }
 0x247   :  { %371 = vsyncpa [#allocation6], 1 }
 0x248   :  { %372 = vsyncpa [#allocation4], 1 }

</bundles_post_ra>
